<compile_context>
chip_gen: v7x
topology: tpu7x:2x2x1
jax: 0.10.0
libtpu: 0.0.40
codegen_flags: <defaults>
</compile_context>

<pallas_src>
from functools import partial
from math import sqrt

import jax
import jax.numpy as jnp
from jax import lax
from jax.experimental import pallas as pl
from jax.experimental.pallas import tpu as pltpu


# --------------------------------------------------------------------------- helpers
def _round_up(x, m):
    return ((x + m - 1) // m) * m


def _gelu_exact(x):
    # exact GELU: 0.5 * x * (1 + erf(x / sqrt(2)))  (matches torch.nn.GELU())
    return 0.5 * x * (1.0 + lax.erf(x * (1.0 / sqrt(2.0))))


def _gelu_tanh(x):
    # tanh-approximate GELU (EUP path); ~1e-3 deviation from torch.nn.GELU()
    c = sqrt(2.0 / 3.141592653589793)
    return 0.5 * x * (1.0 + jnp.tanh(c * (x + 0.044715 * x * x * x)))


# Generation-aware VMEM capacity (v5e/v6e: 128 MiB, v7x: 64 MiB).
try:
    _VMEM_CAP = int(pltpu.get_tpu_info().vmem_capacity_bytes)
except Exception:  # pragma: no cover - conservative fallback off-TPU / older jax
    _VMEM_CAP = 64 << 20


# --------------------------------------------------------------------------- kernel
def _make_decoder_kernel(use_tanh_gelu):
    act = _gelu_tanh if use_tanh_gelu else _gelu_exact

    def kernel(x_ref, w1_ref, b1_ref, w2_ref, b2_ref, w3_ref, b3_ref, o_ref):
        cdt = w1_ref.dtype                       # MXU operand dtype (bf16 or f32)
        x = x_ref[...]                           # [TB, Din_p], already in cdt
        # Layer 1 + GELU  (f32 accumulate, f32 bias/GELU)
        h = jnp.dot(x, w1_ref[...],
                    preferred_element_type=jnp.float32) + b1_ref[...]
        h = act(h)
        # Layer 2 + GELU
        h = jnp.dot(h.astype(cdt), w2_ref[...],
                    preferred_element_type=jnp.float32) + b2_ref[...]
        h = act(h)
        # Layer 3 (output projection)
        out = jnp.dot(h.astype(cdt), w3_ref[...],
                      preferred_element_type=jnp.float32) + b3_ref[...]
        o_ref[...] = out.astype(o_ref.dtype)

    return kernel


# ----------------------------------------------------------------- one-time param prep
def prepare_decoder_params(params, *, compute_dtype=jnp.bfloat16):
    """Pad all feature dims to lane-dense multiples of 128 and cast matmul weights.

    Done ONCE (hoisted out of the per-call path). Zero padding is exact: padded
    hidden/output columns stay identically zero through GELU and later layers.
    Biases stay f32 (bias add / GELU run on the VPU in f32 on every generation).
    Default compute_dtype is bf16: the MXU on v5e/v6e/v7x is a bf16 engine and f32
    operands run multi-pass.
    """
    w1, b1 = params["w1"], params["b1"]
    w2, b2 = params["w2"], params["b2"]
    w3, b3 = params["w3"], params["b3"]

    din, hid = w1.shape
    dout = w3.shape[1]
    din_p, hid_p, dout_p = _round_up(din, 128), _round_up(hid, 128), _round_up(dout, 128)

    def pad2(a, r, c):
        return jnp.pad(a, ((0, r - a.shape[0]), (0, c - a.shape[1])))

    return {
        "w1": pad2(w1, din_p, hid_p).astype(compute_dtype),
        "b1": pad2(b1.reshape(1, -1), 1, hid_p).astype(jnp.float32),
        "w2": pad2(w2, hid_p, hid_p).astype(compute_dtype),
        "b2": pad2(b2.reshape(1, -1), 1, hid_p).astype(jnp.float32),
        "w3": pad2(w3, hid_p, dout_p).astype(compute_dtype),
        "b3": pad2(b3.reshape(1, -1), 1, dout_p).astype(jnp.float32),
    }


def _vmem_estimate(tb, din_p, hid_p, dout_p, w_bytes, in_bytes):
    # Pallas allocates 2 pipeline buffers for EVERY input BlockSpec, including the
    # constant-index weight/bias blocks (they still get double-buffered).
    weights = 2 * ((din_p * hid_p + hid_p * hid_p + hid_p * dout_p) * w_bytes
                   + (2 * hid_p + dout_p) * 4)
    io_tiles = 2 * tb * (din_p * in_bytes + dout_p * 4)   # double-buffered in/out tiles
    interm = 3 * tb * hid_p * 4                           # f32 hidden + cast/GELU temps
    return weights + io_tiles + interm


def _round_tile(tb):
    # MXU M-tiles that are multiples of 256 (v6e/v7x systolic width) avoid partial
    # passes; below that, keep the mandatory 8-sublane multiple.
    if tb >= 256:
        return (tb // 256) * 256
    return max(8, (tb // 8) * 8)


# ------------------------------------------------------------------------ forward pass
@partial(jax.jit, static_argnames=("rec", "out_dim", "block_b", "gelu_approx"))
def visual_decoder_forward(domain_h, semantic_h, prep, *, rec, out_dim,
                           block_b=1024, gelu_approx=False):
    """Pallas-fused forward pass of Visual_Decoder.

    domain_h / semantic_h: [B, Dd] / [B, Ds]
    prep: output of prepare_decoder_params
    rec: 'cat' or 'add'; out_dim: un-padded output feature size.
    """
    w1, b1 = prep["w1"], prep["b1"]
    w2, b2 = prep["w2"], prep["b2"]
    w3, b3 = prep["w3"], prep["b3"]
    din_p, hid_p = w1.shape
    dout_p = w3.shape[1]
    cdt = w1.dtype                       # MXU operand / activation-stream dtype
    w_bytes = cdt.itemsize
    in_bytes = w_bytes                   # activations streamed in the compute dtype

    if rec == "cat":
        parts = [domain_h, semantic_h]
    elif rec == "add":
        if domain_h.shape != semantic_h.shape:
            raise ValueError("rec='add' requires identical feature widths")
        parts = [domain_h + semantic_h]
    else:
        raise ValueError(rec)

    B = domain_h.shape[0]
    din = sum(p.shape[1] for p in parts)
    if din > din_p:
        raise ValueError("input feature dim exceeds prepared weight dim")

    # --- batch tile selection ------------------------------------------------------
    tb = min(_round_tile(block_b), _round_up(B, 8))
    # Keep at least 2 grid steps for sizable batches so both v7x TensorCores get work.
    tb = min(tb, max(8, _round_up(pl.cdiv(B, 2), 256)))
    tb = _round_tile(tb)
    # Shrink until the (double-buffer-honest) estimate fits a generation-aware budget.
    budget = max(16 << 20, int(_VMEM_CAP * 0.45))
    while tb > 8 and _vmem_estimate(tb, din_p, hid_p, dout_p, w_bytes, in_bytes) > budget:
        tb = _round_tile(max(8, tb // 2))
    nb = pl.cdiv(B, tb)
    b_pad = nb * tb

    # --- build padded activation slab in one fused pass -----------------------------
    # concat (or add) + feature zero-pad + dtype cast in a single concatenate; batch
    # padding only when B is not a multiple of the tile.
    if din_p > din:
        parts = parts + [jnp.zeros((B, din_p - din), cdt)]
    x_p = jnp.concatenate([p.astype(cdt) for p in parts], axis=1)
    if b_pad > B:
        x_p = jnp.concatenate([x_p, jnp.zeros((b_pad - B, din_p), cdt)], axis=0)

    flops = 2 * b_pad * (din_p * hid_p + hid_p * hid_p + hid_p * dout_p)
    bytes_accessed = (b_pad * (din_p * in_bytes + dout_p * 4)
                      + w_bytes * (din_p * hid_p + hid_p * hid_p + hid_p * dout_p)
                      + 4 * (2 * hid_p + dout_p))
    transcendentals = 2 * b_pad * hid_p
    est = _vmem_estimate(tb, din_p, hid_p, dout_p, w_bytes, in_bytes)
    vmem_limit = int(min(max(int(1.5 * est), 16 << 20), int(_VMEM_CAP * 0.9)))

    out_p = pl.pallas_call(
        _make_decoder_kernel(gelu_approx),
        out_shape=jax.ShapeDtypeStruct((b_pad, dout_p), jnp.float32),
        grid=(nb,),
        in_specs=[
            pl.BlockSpec((tb, din_p), lambda i: (i, 0)),       # activation tile
            pl.BlockSpec((din_p, hid_p), lambda i: (0, 0)),    # weights stay resident
            pl.BlockSpec((1, hid_p), lambda i: (0, 0)),
            pl.BlockSpec((hid_p, hid_p), lambda i: (0, 0)),
            pl.BlockSpec((1, hid_p), lambda i: (0, 0)),
            pl.BlockSpec((hid_p, dout_p), lambda i: (0, 0)),
            pl.BlockSpec((1, dout_p), lambda i: (0, 0)),
        ],
        out_specs=pl.BlockSpec((tb, dout_p), lambda i: (i, 0)),
        compiler_params=pltpu.CompilerParams(
            dimension_semantics=("parallel",),
            vmem_limit_bytes=vmem_limit,
        ),
        cost_estimate=pl.CostEstimate(
            flops=flops,
            transcendentals=transcendentals,
            bytes_accessed=bytes_accessed,
        ),
    )(x_p, w1, b1, w2, b2, w3, b3)

    return out_p[:B, :out_dim]


# ------------------------------------------------------------------------------ init
def init_params(key, input_dim, hidden_dim, output_dim):
    """Deterministic normal(0, 0.02) init (mirrors weights_init_normal)."""
    ks = jax.random.split(key, 6)
    std = 0.02
    return {
        "w1": std * jax.random.normal(ks[0], (input_dim, hidden_dim), jnp.float32),
        "b1": std * jax.random.normal(ks[1], (1, hidden_dim), jnp.float32),
        "w2": std * jax.random.normal(ks[2], (hidden_dim, hidden_dim), jnp.float32),
        "b2": std * jax.random.normal(ks[3], (1, hidden_dim), jnp.float32),
        "w3": std * jax.random.normal(ks[4], (hidden_dim, output_dim), jnp.float32),
        "b3": std * jax.random.normal(ks[5], (1, output_dim), jnp.float32),
    }


def _reference_forward(domain_h, semantic_h, params, *, rec="cat"):
    # pure-JAX reference for correctness check
    if rec == "cat":
        x = jnp.concatenate([domain_h, semantic_h], axis=1)
    else:
        x = domain_h + semantic_h
    h = jax.nn.gelu(x @ params["w1"] + params["b1"], approximate=False)
    h = jax.nn.gelu(h @ params["w2"] + params["b2"], approximate=False)
    return h @ params["w3"] + params["b3"]


# ------------------------------------------------------------------------------ main
if __name__ == "__main__":
    # small synthetic config (opt.rec='cat', output_dim_S=16, output_dim_D=16,
    # hidden_dim_dec=32, decoder output_dim=64, batch=4)
    rec = "cat"
    batch = 4
    output_dim_S = 16
    output_dim_D = 16
    hidden_dim_dec = 32
    output_dim = 64
    input_dim = output_dim_S + output_dim_D if rec == "cat" else output_dim_S

    key = jax.random.PRNGKey(0)
    k_d, k_s, k_p = jax.random.split(key, 3)
    domain_h = jax.random.normal(k_d, (batch, output_dim_D), jnp.float32)
    semantic_h = jax.random.normal(k_s, (batch, output_dim_S), jnp.float32)
    params = init_params(k_p, input_dim, hidden_dim_dec, output_dim)
    ref = _reference_forward(domain_h, semantic_h, params, rec=rec)

    # --- default path: bf16 MXU operands, f32 accumulate / bias / GELU ---
    prep_bf16 = prepare_decoder_params(params)           # compute_dtype=bf16 default
    out_bf = visual_decoder_forward(domain_h, semantic_h, prep_bf16,
                                    rec=rec, out_dim=output_dim)
    out_bf = jax.block_until_ready(out_bf)
    assert out_bf.shape == (batch, output_dim)
    assert jnp.allclose(out_bf, ref, atol=1e-2, rtol=5e-2)

    # --- f32 MXU path (bit-faithful to the PyTorch module semantics) ---
    prep_f32 = prepare_decoder_params(params, compute_dtype=jnp.float32)
    out = visual_decoder_forward(domain_h, semantic_h, prep_f32,
                                 rec=rec, out_dim=output_dim)
    out = jax.block_until_ready(out)
    assert jnp.allclose(out, ref, atol=1e-5, rtol=1e-5)

    # --- 'add' recombination path ---
    params_add = init_params(k_p, output_dim_S, hidden_dim_dec, output_dim)
    domain_h2 = jax.random.normal(k_d, (batch, output_dim_S), jnp.float32)
    prep_add = prepare_decoder_params(params_add, compute_dtype=jnp.float32)
    out_add = visual_decoder_forward(domain_h2, semantic_h, prep_add,
                                     rec="add", out_dim=output_dim)
    out_add = jax.block_until_ready(out_add)
    ref_add = _reference_forward(domain_h2, semantic_h, params_add, rec="add")
    assert jnp.allclose(out_add, ref_add, atol=1e-5, rtol=1e-5)

    print("KERNEL_OK")
</pallas_src>

<mosaic_0001>
module attributes {stable_mosaic.version = 11 : i64} {
  func.func @kernel(%arg0: i32, %arg1: memref<8x128xbf16, #tpu.memory_space<vmem>>, %arg2: memref<128x128xbf16, #tpu.memory_space<vmem>>, %arg3: memref<1x128xf32, #tpu.memory_space<vmem>>, %arg4: memref<128x128xbf16, #tpu.memory_space<vmem>>, %arg5: memref<1x128xf32, #tpu.memory_space<vmem>>, %arg6: memref<128x128xbf16, #tpu.memory_space<vmem>>, %arg7: memref<1x128xf32, #tpu.memory_space<vmem>>, %arg8: memref<8x128xf32, #tpu.memory_space<vmem>>) attributes {dimension_semantics = [#tpu.dimension_semantics<parallel>], iteration_bounds = array<i64: 1>, scalar_prefetch = 0 : i64, scratch_operands = 0 : i64, tpu.core_type = #tpu.core_type<tc>, window_params = [{transform_indices = @transform_0, window_bounds = array<i64: 8, 128>}, {pipeline_mode = #tpu.pipeline_mode<synchronous>, transform_indices = @transform_1, window_bounds = array<i64: 128, 128>}, {pipeline_mode = #tpu.pipeline_mode<synchronous>, transform_indices = @transform_2, window_bounds = array<i64: 1, 128>}, {pipeline_mode = #tpu.pipeline_mode<synchronous>, transform_indices = @transform_3, window_bounds = array<i64: 128, 128>}, {pipeline_mode = #tpu.pipeline_mode<synchronous>, transform_indices = @transform_4, window_bounds = array<i64: 1, 128>}, {pipeline_mode = #tpu.pipeline_mode<synchronous>, transform_indices = @transform_5, window_bounds = array<i64: 128, 128>}, {pipeline_mode = #tpu.pipeline_mode<synchronous>, transform_indices = @transform_6, window_bounds = array<i64: 1, 128>}, {transform_indices = @transform_7, window_bounds = array<i64: 8, 128>}]} {
    %c0 = arith.constant 0 : index
    %c0_0 = arith.constant 0 : index
    %0 = vector.load %arg1[%c0, %c0_0] : memref<8x128xbf16, #tpu.memory_space<vmem>>, vector<8x128xbf16>
    %c0_1 = arith.constant 0 : index
    %c0_2 = arith.constant 0 : index
    %1 = vector.load %arg2[%c0_1, %c0_2] : memref<128x128xbf16, #tpu.memory_space<vmem>>, vector<128x128xbf16>
    %cst = arith.constant dense<0.000000e+00> : vector<8x128xf32>
    %2 = tpu.matmul %0, %1, %cst {dimension_numbers = #tpu.dot_dimension_numbers<[1], [0], [0], [1], [0, 0, 1, 1], [], []>} : vector<8x128xbf16>, vector<128x128xbf16>, vector<8x128xf32> -> vector<8x128xf32>
    %c0_3 = arith.constant 0 : index
    %c0_4 = arith.constant 0 : index
    %3 = vector.load %arg3[%c0_3, %c0_4] : memref<1x128xf32, #tpu.memory_space<vmem>>, vector<1x128xf32>
    %4 = vector.broadcast %3 : vector<1x128xf32> to vector<8x128xf32>
    %5 = arith.addf %2, %4 : vector<8x128xf32>
    %cst_5 = arith.constant 5.000000e-01 : f32
    %6 = vector.broadcast %cst_5 : f32 to vector<8x128xf32>
    %7 = arith.mulf %6, %5 : vector<8x128xf32>
    %cst_6 = arith.constant 0.707106769 : f32
    %8 = vector.broadcast %cst_6 : f32 to vector<8x128xf32>
    %9 = arith.mulf %5, %8 : vector<8x128xf32>
    %10 = math.erf %9 : vector<8x128xf32>
    %cst_7 = arith.constant 1.000000e+00 : f32
    %11 = vector.broadcast %cst_7 : f32 to vector<8x128xf32>
    %12 = arith.addf %11, %10 : vector<8x128xf32>
    %13 = arith.mulf %7, %12 : vector<8x128xf32>
    %14 = arith.truncf %13 : vector<8x128xf32> to vector<8x128xbf16>
    %c0_8 = arith.constant 0 : index
    %c0_9 = arith.constant 0 : index
    %15 = vector.load %arg4[%c0_8, %c0_9] : memref<128x128xbf16, #tpu.memory_space<vmem>>, vector<128x128xbf16>
    %cst_10 = arith.constant dense<0.000000e+00> : vector<8x128xf32>
    %16 = tpu.matmul %14, %15, %cst_10 {dimension_numbers = #tpu.dot_dimension_numbers<[1], [0], [0], [1], [0, 0, 1, 1], [], []>} : vector<8x128xbf16>, vector<128x128xbf16>, vector<8x128xf32> -> vector<8x128xf32>
    %c0_11 = arith.constant 0 : index
    %c0_12 = arith.constant 0 : index
    %17 = vector.load %arg5[%c0_11, %c0_12] : memref<1x128xf32, #tpu.memory_space<vmem>>, vector<1x128xf32>
    %18 = vector.broadcast %17 : vector<1x128xf32> to vector<8x128xf32>
    %19 = arith.addf %16, %18 : vector<8x128xf32>
    %cst_13 = arith.constant 5.000000e-01 : f32
    %20 = vector.broadcast %cst_13 : f32 to vector<8x128xf32>
    %21 = arith.mulf %20, %19 : vector<8x128xf32>
    %cst_14 = arith.constant 0.707106769 : f32
    %22 = vector.broadcast %cst_14 : f32 to vector<8x128xf32>
    %23 = arith.mulf %19, %22 : vector<8x128xf32>
    %24 = math.erf %23 : vector<8x128xf32>
    %cst_15 = arith.constant 1.000000e+00 : f32
    %25 = vector.broadcast %cst_15 : f32 to vector<8x128xf32>
    %26 = arith.addf %25, %24 : vector<8x128xf32>
    %27 = arith.mulf %21, %26 : vector<8x128xf32>
    %28 = arith.truncf %27 : vector<8x128xf32> to vector<8x128xbf16>
    %c0_16 = arith.constant 0 : index
    %c0_17 = arith.constant 0 : index
    %29 = vector.load %arg6[%c0_16, %c0_17] : memref<128x128xbf16, #tpu.memory_space<vmem>>, vector<128x128xbf16>
    %cst_18 = arith.constant dense<0.000000e+00> : vector<8x128xf32>
    %30 = tpu.matmul %28, %29, %cst_18 {dimension_numbers = #tpu.dot_dimension_numbers<[1], [0], [0], [1], [0, 0, 1, 1], [], []>} : vector<8x128xbf16>, vector<128x128xbf16>, vector<8x128xf32> -> vector<8x128xf32>
    %c0_19 = arith.constant 0 : index
    %c0_20 = arith.constant 0 : index
    %31 = vector.load %arg7[%c0_19, %c0_20] : memref<1x128xf32, #tpu.memory_space<vmem>>, vector<1x128xf32>
    %32 = vector.broadcast %31 : vector<1x128xf32> to vector<8x128xf32>
    %33 = arith.addf %30, %32 : vector<8x128xf32>
    %c0_21 = arith.constant 0 : index
    %c0_22 = arith.constant 0 : index
    %34 = vector.load %arg8[%c0_21, %c0_22] : memref<8x128xf32, #tpu.memory_space<vmem>>, vector<8x128xf32>
    tpu.vector_store %arg8[%c0_21, %c0_22], %33 {strides = array<i32>} : memref<8x128xf32, #tpu.memory_space<vmem>>, vector<8x128xf32>,
    return
  }
  func.func @transform_0(%arg0: i32) -> (i32, i32) {
    %c0_i32 = arith.constant 0 : i32
    %c0_i32_0 = arith.constant 0 : i32
    return %arg0, %c0_i32 : i32, i32
  }
  func.func @transform_1(%arg0: i32) -> (i32, i32) {
    %c0_i32 = arith.constant 0 : i32
    %c0_i32_0 = arith.constant 0 : i32
    %c0_i32_1 = arith.constant 0 : i32
    return %c0_i32, %c0_i32_0 : i32, i32
  }
  func.func @transform_2(%arg0: i32) -> (i32, i32) {
    %c0_i32 = arith.constant 0 : i32
    %c0_i32_0 = arith.constant 0 : i32
    %c0_i32_1 = arith.constant 0 : i32
    return %c0_i32, %c0_i32_0 : i32, i32
  }
  func.func @transform_3(%arg0: i32) -> (i32, i32) {
    %c0_i32 = arith.constant 0 : i32
    %c0_i32_0 = arith.constant 0 : i32
    %c0_i32_1 = arith.constant 0 : i32
    return %c0_i32, %c0_i32_0 : i32, i32
  }
  func.func @transform_4(%arg0: i32) -> (i32, i32) {
    %c0_i32 = arith.constant 0 : i32
    %c0_i32_0 = arith.constant 0 : i32
    %c0_i32_1 = arith.constant 0 : i32
    return %c0_i32, %c0_i32_0 : i32, i32
  }
  func.func @transform_5(%arg0: i32) -> (i32, i32) {
    %c0_i32 = arith.constant 0 : i32
    %c0_i32_0 = arith.constant 0 : i32
    %c0_i32_1 = arith.constant 0 : i32
    return %c0_i32, %c0_i32_0 : i32, i32
  }
  func.func @transform_6(%arg0: i32) -> (i32, i32) {
    %c0_i32 = arith.constant 0 : i32
    %c0_i32_0 = arith.constant 0 : i32
    %c0_i32_1 = arith.constant 0 : i32
    return %c0_i32, %c0_i32_0 : i32, i32
  }
  func.func @transform_7(%arg0: i32) -> (i32, i32) {
    %c0_i32 = arith.constant 0 : i32
    %c0_i32_0 = arith.constant 0 : i32
    return %arg0, %c0_i32 : i32, i32
  }
}

</mosaic_0001>

<bundles_post_ra>
// kernel: visual_decoder_forward.1
= control target key start
LH: loop header
LB: loop body
LE: loop exit
PB: predicated region body
PF: predicated region fallthrough
CT: control target
= control target key end

     0   :  { %12 = vsyncpa [#allocation3], 0  ;;  %s784_s0 = inlined_call_operand.vmem [shape: bf16[8,128], index: 0, kind: input, shape index: {}]   ;;  %s785_s1 = inlined_call_operand.hbm [shape: bf16[128,128], index: 1, kind: input, shape index: {}]   ;;  %s786_s2 = inlined_call_operand.vmem [shape: f32[1,128], index: 2, kind: input, shape index: {}]   ;;  %s787_s3 = inlined_call_operand.hbm [shape: bf16[128,128], index: 3, kind: input, shape index: {}]   ;;  %s788_s4 = inlined_call_operand.vmem [shape: f32[1,128], index: 4, kind: input, shape index: {}]   ;;  %s789_s5 = inlined_call_operand.hbm [shape: bf16[128,128], index: 5, kind: input, shape index: {}]   ;;  %s790_s6 = inlined_call_operand.vmem [shape: f32[1,128], index: 6, kind: input, shape index: {}]   ;;  %s791_s7 = inlined_call_operand.vmem [shape: f32[8,128], index: 7, kind: output, shape index: {}]  }
   0x1   :  { %13 = vsyncpa [#allocation5], 0  ;;  %s640_s24 = smov [#allocation4]   ;;  %s641_s26 = smov [#allocation2]  }
   0x2   :  { %s35_s25 = sshll.u32 %s640_s24, 4  ;;  %s21_s27 = sshll.u32 %s641_s26, 4  ;;  %s36_s25 = int_to_ptr.vmem [resolvable:$true] %s35_s25  ;;  %s687_s27 = int_to_ptr.vmem [resolvable:$true] %s21_s27 }
   0x3   :  { %s570_s30 = scalar_lea.hbm %s787_s3, 1024 }
   0x4   :  { %p571_p0 = scmp.ne.s32.totalorder %s787_s3, %s570_s30  ;;  %p574_p1 = scmp.lt.u32.totalorder %s570_s30, %s787_s3 }
   0x6   :  { %p576_p2 = pnand %p574_p1, %p571_p0 }
   0x8   :  { %579 = shalt.err (!%p576_p2)
}
   0x9   :  { %s580_s12 = scalar_lea.vmem %s36_s25, 1024  ;;  %p585_p4 = scmp.lt.s32.totalorder %s36_s25, %s36_s25 }
   0xa   :  { %p581_p3 = scmp.ne.s32.totalorder %s36_s25, %s580_s12  ;;  %p586_p5 = scmp.lt.s32.totalorder %s580_s12, %s580_s12 }
   0xc   :  { %p587_p6 = por %p586_p5, %p585_p4 }
   0xe   :  { %p588_p7 = pnand %p587_p6, %p581_p3 }
  0x10   :  { %591 = shalt.err (!%p588_p7)
}
  0x11   :  { %s642_s13 = smov 64   ;;  %s643_s14 = smov 4  }
  0x12   :  { %41 = dma.hbm_to_vmem [thread:$0]  %s787_s3, 1024, %s36_s25, [#allocation5], %s642_s13, %s642_s13, %s643_s14  }
  0x13   :  { %s592_s19 = scalar_lea.hbm %s785_s1, 1024 }
  0x14   :  { %p593_p8 = scmp.ne.s32.totalorder %s785_s1, %s592_s19  ;;  %p596_p9 = scmp.lt.u32.totalorder %s592_s19, %s785_s1 }
  0x16   :  { %p598_p10 = pnand %p596_p9, %p593_p8 }
  0x18   :  { %601 = shalt.err (!%p598_p10)
}
  0x19   :  { %s602_s24 = scalar_lea.vmem %s687_s27, 1024  ;;  %p607_p12 = scmp.lt.s32.totalorder %s687_s27, %s687_s27 }
  0x1a   :  { %p603_p11 = scmp.ne.s32.totalorder %s687_s27, %s602_s24  ;;  %p608_p13 = scmp.lt.s32.totalorder %s602_s24, %s602_s24 }
  0x1c   :  { %p609_p0 = por %p608_p13, %p607_p12 }
  0x1e   :  { %p610_p1 = pnand %p609_p0, %p603_p11 }
  0x20   :  { %613 = shalt.err (!%p610_p1)
}
  0x21   :  { %27 = dma.hbm_to_vmem [thread:$0]  %s785_s1, 1024, %s687_s27, [#allocation3], %s642_s13, %s642_s13, %s643_s14  }
  0x22   :  { %s644_s26 = smov [#allocation6]   ;;  %s614_s8 = scalar_lea.hbm %s789_s5, 1024 }
  0x23   :  { %s49_s28 = sshll.u32 %s644_s26, 4  ;;  %p615_p2 = scmp.ne.s32.totalorder %s789_s5, %s614_s8  ;;  %s50_s28 = int_to_ptr.vmem [resolvable:$true] %s49_s28 }
  0x24   :  { %p618_p3 = scmp.lt.u32.totalorder %s614_s8, %s789_s5 }
  0x26   :  { %p620_p4 = pnand %p618_p3, %p615_p2 }
  0x28   :  { %623 = shalt.err (!%p620_p4)
}
  0x29   :  { %s624_s15 = scalar_lea.vmem %s50_s28, 1024  ;;  %p629_p6 = scmp.lt.s32.totalorder %s50_s28, %s50_s28 }
  0x2a   :  { %p625_p5 = scmp.ne.s32.totalorder %s50_s28, %s624_s15  ;;  %p630_p7 = scmp.lt.s32.totalorder %s624_s15, %s624_s15 }
  0x2c   :  { %p631_p8 = por %p630_p7, %p629_p6 }
  0x2e   :  { %p632_p9 = pnand %p631_p8, %p625_p5 }
  0x30   :  { %635 = shalt.err (!%p632_p9)
}
  0x31   :  { %55 = dma.hbm_to_vmem [thread:$0]  %s789_s5, 1024, %s50_s28, [#allocation5], %s642_s13, %s642_s13, %s643_s14  }
  0x32   :  { %636 = dma.done.wait [#allocation3], 1024  }
  0x33   :  { %637 = vsyncadd [#allocation3], 4294966272 }
  0x34   :  { %638 = dma.done.wait [#allocation5], 2048  }
  0x35   :  { %639 = vsyncadd [#allocation5], 4294965248  ;;  %v645_v0 = vmov 0.0   ;;  %vm646_vm0 = vmmov 0   ;;  %v542_v1 = vld [vmem:[#allocation2] sm:$0xff]   ;;  %v543_v2 = vld [vmem:[#allocation2 + $0x8] sm:$0xff]  }
  0x36   :  { %475 = vmatprep.subr.bf16.mxu0 %v645_v0  ;;  %491 = vmatprep.mubr.msk.bf16.mxu0 %vm646_vm0, %v645_v0  ;;  %v544_v3 = vld [vmem:[#allocation2 + $0x10] sm:$0xff]   ;;  %v550_v4 = vld [vmem:[#allocation4] sm:$0xff]   ;;  %v545_v5 = vld [vmem:[#allocation2 + $0x18] sm:$0xff]  }
  0x37   :  { %495 = vmatprep.subr.bf16.mxu1 %v645_v0  ;;  %511 = vmatprep.mubr.msk.bf16.mxu1 %vm646_vm0, %v645_v0  ;;  %v551_v6 = vld [vmem:[#allocation4 + $0x8] sm:$0xff]   ;;  %v546_v7 = vld [vmem:[#allocation2 + $0x20] sm:$0xff]   ;;  %v552_v8 = vld [vmem:[#allocation4 + $0x10] sm:$0xff]  }
  0x38   :  { %476 = vmatpush3.bf16.msra.mxu0 %v542_v1  ;;  %496 = vmatpush3.bf16.msra.mxu1 %v550_v4  ;;  %v547_v9 = vld [vmem:[#allocation2 + $0x28] sm:$0xff]   ;;  %v548_v10 = vld [vmem:[#allocation2 + $0x30] sm:$0xff]   ;;  %v549_v11 = vld [vmem:[#allocation2 + $0x38] sm:$0xff]  }
  0x39   :  { %477 = vmatprep.subr.bf16.mxu0 %v645_v0  ;;  %497 = vmatprep.subr.bf16.mxu1 %v645_v0  ;;  %v68_v12 = vld [vmem:[%s784_s0] sm:$0xf]  ;;  %v553_v13 = vld [vmem:[#allocation4 + $0x18] sm:$0xff]   ;;  %v555_v15 = vld [vmem:[#allocation4 + $0x28] sm:$0xff]  }
  0x3a   :  { %v554_v14 = vld [vmem:[#allocation4 + $0x20] sm:$0xff]   ;;  %v556_v16 = vld [vmem:[#allocation4 + $0x30] sm:$0xff]   ;;  %v557_v17 = vld [vmem:[#allocation4 + $0x38] sm:$0xff]  }
  0x3b   :  { %v558_v18 = vld [vmem:[#allocation6] sm:$0xff]   ;;  %v559_v19 = vld [vmem:[#allocation6 + $0x8] sm:$0xff]   ;;  %v560_v20 = vld [vmem:[#allocation6 + $0x10] sm:$0xff]  }
  0x3c   :  { %478 = vmatpush3.bf16.msra.mxu0 %v543_v2  ;;  %498 = vmatpush3.bf16.msra.mxu1 %v551_v6  ;;  %v421_v21 = vld [vmem:[%s786_s2] ss:$0 sm:$0xff]  ;;  %v561_v33 = vld [vmem:[#allocation6 + $0x18] sm:$0xff]   ;;  %v563_v35 = vld [vmem:[#allocation6 + $0x28] sm:$0xff]  }
  0x3d   :  { %479 = vmatprep.subr.bf16.mxu0 %v645_v0  ;;  %499 = vmatprep.subr.bf16.mxu1 %v645_v0  ;;  %v562_v34 = vld [vmem:[#allocation6 + $0x20] sm:$0xff]   ;;  %v564_v36 = vld [vmem:[#allocation6 + $0x30] sm:$0xff]   ;;  %v565_v37 = vld [vmem:[#allocation6 + $0x38] sm:$0xff]  }
  0x3e   :  { %v430_v38 = vld [vmem:[%s788_s4] ss:$0 sm:$0xff] }
  0x3f   :  { %v439_v50 = vld [vmem:[%s790_s6] ss:$0 sm:$0xff] }
  0x40   :  { %480 = vmatpush3.bf16.msra.mxu0 %v544_v3  ;;  %500 = vmatpush3.bf16.msra.mxu1 %v552_v8 }
  0x41   :  { %481 = vmatprep.subr.bf16.mxu0 %v645_v0  ;;  %501 = vmatprep.subr.bf16.mxu1 %v645_v0 }
  0x44   :  { %482 = vmatpush3.bf16.msra.mxu0 %v545_v5  ;;  %502 = vmatpush3.bf16.msra.mxu1 %v553_v13 }
  0x45   :  { %483 = vmatprep.subr.bf16.mxu0 %v645_v0  ;;  %503 = vmatprep.subr.bf16.mxu1 %v645_v0 }
  0x48   :  { %484 = vmatpush3.bf16.msra.mxu0 %v546_v7  ;;  %504 = vmatpush3.bf16.msra.mxu1 %v554_v14 }
  0x49   :  { %485 = vmatprep.subr.bf16.mxu0 %v645_v0  ;;  %505 = vmatprep.subr.bf16.mxu1 %v645_v0 }
  0x4c   :  { %486 = vmatpush3.bf16.msra.mxu0 %v547_v9  ;;  %506 = vmatpush3.bf16.msra.mxu1 %v555_v15 }
  0x4d   :  { %487 = vmatprep.subr.bf16.mxu0 %v645_v0  ;;  %507 = vmatprep.subr.bf16.mxu1 %v645_v0 }
  0x50   :  { %488 = vmatpush3.bf16.msra.mxu0 %v548_v10  ;;  %508 = vmatpush3.bf16.msra.mxu1 %v556_v16 }
  0x51   :  { %489 = vmatprep.subr.bf16.mxu0 %v645_v0  ;;  %509 = vmatprep.subr.bf16.mxu1 %v645_v0 }
  0x54   :  { %490 = vmatpush3.bf16.msra.mxu0 %v549_v11  ;;  %510 = vmatpush3.bf16.msra.mxu1 %v557_v17 }
  0x55   :  { %515 = vmatprep.subr.bf16.mxu0 %v645_v0 }
  0x57   :  { %492 = vmatmul.mubr.bf16.vlgmr.msra.gmra.mrb[0].mxu0 %v68_v12 }
  0x58   :  { %531 = vmatprep.mubr.msk.bf16.mxu0 %vm646_vm0, %v645_v0  ;;  %516 = vmatpush3.bf16.msra.mxu0 %v558_v18 }
  0x59   :  { %517 = vmatprep.subr.bf16.mxu0 %v645_v0 }
  0x5c   :  { %518 = vmatpush3.bf16.msra.mxu0 %v559_v19 }
  0x5d   :  { %519 = vmatprep.subr.bf16.mxu0 %v645_v0 }
  0x60   :  { %520 = vmatpush3.bf16.msra.mxu0 %v560_v20 }
  0x61   :  { %521 = vmatprep.subr.bf16.mxu0 %v645_v0 }
  0x64   :  { %522 = vmatpush3.bf16.msra.mxu0 %v561_v33 }
  0x65   :  { %523 = vmatprep.subr.bf16.mxu0 %v645_v0 }
  0x68   :  { %524 = vmatpush3.bf16.msra.mxu0 %v562_v34 }
  0x69   :  { %525 = vmatprep.subr.bf16.mxu0 %v645_v0 }
  0x6c   :  { %526 = vmatpush3.bf16.msra.mxu0 %v563_v35 }
  0x6d   :  { %527 = vmatprep.subr.bf16.mxu0 %v645_v0 }
  0x70   :  { %528 = vmatpush3.bf16.msra.mxu0 %v564_v36 }
  0x71   :  { %529 = vmatprep.subr.bf16.mxu0 %v645_v0 }
  0x74   :  { %530 = vmatpush3.bf16.msra.mxu0 %v565_v37 }
 0x12a   :  { %v174_v22 = vpop.f32.mrb[0].mxu0 }
 0x12b   :  { %v175_v23 = vadd.f32 %v421_v21, %v174_v22  ;;  %v493_v24 = vpop.f32.mrb[1].mxu0 }
 0x12c   :  { %v177_v25 = vpop.f32.mrb[2].mxu0 }
 0x12d   :  { %v181_v26 = vmul.f32 0.70710677, %v175_v23  ;;  %v494_v27 = vpop.f32.mrb[3].mxu0  ;;  %v180_v29 = vmul.f32 0.5, %v175_v23 }
 0x12f   :  { %566 = verf.f32 %v181_v26 }
 0x139   :  { %v567_v28 = vpop.eup %566 }
 0x13a   :  { %v183_v30 = vadd.f32 1.0, %v567_v28 }
 0x13c   :  { %v184_v31 = vmul.f32 %v183_v30, %v180_v29 }
 0x13e   :  { %v185_v32 = vpack.c.bf16 %v184_v31, %v184_v31 }
 0x140   :  { %512 = vmatmul.mubr.bf16.vlgmr.msra.gmra.mrb[0].mxu1 %v185_v32 }
 0x213   :  { %v291_v39 = vpop.f32.mrb[0].mxu1 }
 0x214   :  { %v292_v40 = vadd.f32 %v430_v38, %v291_v39  ;;  %v513_v41 = vpop.f32.mrb[1].mxu1 }
 0x215   :  { %v294_v42 = vpop.f32.mrb[2].mxu1 }
 0x216   :  { %v298_v43 = vmul.f32 0.70710677, %v292_v40  ;;  %v514_v44 = vpop.f32.mrb[3].mxu1  ;;  %v297_v46 = vmul.f32 0.5, %v292_v40 }
 0x218   :  { %568 = verf.f32 %v298_v43 }
 0x222   :  { %v569_v45 = vpop.eup %568 }
 0x223   :  { %v300_v47 = vadd.f32 1.0, %v569_v45 }
 0x225   :  { %v301_v48 = vmul.f32 %v300_v47, %v297_v46 }
 0x227   :  { %v302_v49 = vpack.c.bf16 %v301_v48, %v301_v48 }
 0x229   :  { %532 = vmatmul.mubr.bf16.vlgmr.msra.gmra.mrb[4].mxu0 %v302_v49 }
 0x2fc   :  { %v408_v51 = vpop.f32.mrb[4].mxu0 }
 0x2fd   :  { %v409_v52 = vadd.f32 %v439_v50, %v408_v51  ;;  %v533_v53 = vpop.f32.mrb[5].mxu0 }
 0x2fe   :  { %v411_v54 = vpop.f32.mrb[6].mxu0 }
 0x2ff   :  { %414 = vst [vmem:[%s791_s7] sm:$0xff] %v409_v52  ;;  %v534_v55 = vpop.f32.mrb[7].mxu0 }
 0x300   :  { %419 = vsyncpa [#allocation3], 1 }
 0x301   :  { %420 = vsyncpa [#allocation5], 1 }

</bundles_post_ra>
